<compile_context>
chip_gen: v7x
topology: tpu7x:2x2x1
jax: 0.10.0
libtpu: 0.0.40
codegen_flags: <defaults>
</compile_context>

<pallas_src>
import functools
import math

import numpy as np

import jax
import jax.numpy as jnp
from jax.experimental import pallas as pl
from jax.experimental.pallas import tpu as pltpu


# ---------------------------------------------------------------------------
# helpers
# ---------------------------------------------------------------------------
def _round_up(x, m):
    return (x + m - 1) // m * m


def _choose_tm(M, block_m):
    """Row-tile size: single block for small M; for large M pick a tile that
    splits the grid (roughly) evenly so v7x's two TensorCores both get work
    under dimension_semantics=('parallel',)."""
    if M <= block_m:
        return M
    half = _round_up(pl.cdiv(M, 2), 256)
    return min(block_m, half)


def _gelu(x):
    # tanh-approximate GELU (same formula used in kernel and reference).
    c = math.sqrt(2.0 / math.pi)
    return 0.5 * x * (1.0 + jnp.tanh(c * (x + 0.044715 * (x * x * x))))


# ---------------------------------------------------------------------------
# patch embedding (Conv2d k=stride=P, pad=0  ->  GEMM)
# ---------------------------------------------------------------------------
def _patch_embed_kernel(x_ref, w_ref, b_ref, o_ref):
    # (TM, Kp) bf16 @ (Kp, Np) bf16 on the MXU, f32 accumulation, f32 bias,
    # single narrowing cast at the store.
    acc = jnp.dot(x_ref[...], w_ref[...], preferred_element_type=jnp.float32)
    o_ref[...] = (acc + b_ref[...]).astype(o_ref.dtype)


@functools.partial(jax.jit, static_argnames=("patch_size", "block_m", "out_dtype"))
def patch_embedding(x, weight, bias, *, patch_size, block_m=1024,
                    out_dtype=jnp.bfloat16):
    """x: (B, C, H, W) NCHW; weight: (E, C, P, P) OIHW; bias: (E,)
    returns (B, num_patches, E) == PatchEmbedding.forward(x)."""
    B, C, H, W = x.shape
    P = patch_size
    E = weight.shape[0]
    assert H % P == 0 and W % P == 0, "Image size must be divisible by patch size"
    nh, nw = H // P, W // P
    num_patches = nh * nw

    M = B * num_patches            # rows (patches)
    K = C * P * P                  # contraction dim
    Kp = _round_up(K, 128)         # (#3) full-width MXU passes
    Np = _round_up(E, 128)         # lane-dense output
    TM = _choose_tm(M, block_m)    # (#4)/(#5)

    # (#2) bf16 cast happens before the transpose; any materialized pass is
    # f32-read / bf16-write only.  Feature order (c, ph, pw) matches weight.
    xb = x.astype(jnp.bfloat16)
    xp = xb.reshape(B, C, nh, P, nw, P).transpose(0, 2, 4, 1, 3, 5).reshape(M, K)

    w2d = weight.reshape(E, K).T.astype(jnp.bfloat16)     # (K, E)
    b2d = bias.astype(jnp.float32).reshape(1, E)          # bias stays f32
    if Kp != K:
        xp = jnp.pad(xp, ((0, 0), (0, Kp - K)))
        w2d = jnp.pad(w2d, ((0, Kp - K), (0, 0)))
    if Np != E:
        w2d = jnp.pad(w2d, ((0, 0), (0, Np - E)))
        b2d = jnp.pad(b2d, ((0, 0), (0, Np - E)))

    out_itemsize = np.dtype(out_dtype).itemsize
    cost = pl.CostEstimate(                               # (#9)
        flops=2 * M * Kp * Np,
        transcendentals=0,
        bytes_accessed=(M * Kp * 2 + Kp * Np * 2 + Np * 4 + M * Np * out_itemsize),
    )

    out = pl.pallas_call(
        _patch_embed_kernel,
        out_shape=jax.ShapeDtypeStruct((M, Np), out_dtype),   # (#1)
        grid_spec=pltpu.PrefetchScalarGridSpec(
            num_scalar_prefetch=0,
            grid=(pl.cdiv(M, TM),),
            in_specs=[
                pl.BlockSpec((TM, Kp), lambda i: (i, 0)),   # activations, M-tiled
                pl.BlockSpec((Kp, Np), lambda i: (0, 0)),   # weight, resident
                pl.BlockSpec((1, Np), lambda i: (0, 0)),    # bias, resident
            ],
            out_specs=pl.BlockSpec((TM, Np), lambda i: (i, 0)),
        ),
        compiler_params=pltpu.CompilerParams(
            dimension_semantics=("parallel",),
            allow_input_fusion=[True, False, False],
            vmem_limit_bytes=32 * 1024 * 1024,
        ),
        cost_estimate=cost,
    )(xp, w2d, b2d)

    # (#7) no-op when E % 128 == 0; otherwise left adjacent to the consumer.
    return out[:, :E].reshape(B, num_patches, E)


# ---------------------------------------------------------------------------
# generic linear (+ optional GELU) kernel — QKV / out-proj / MLP / head
# ---------------------------------------------------------------------------
def _linear_kernel(x_ref, w_ref, b_ref, o_ref, *, activation):
    acc = jnp.dot(x_ref[...], w_ref[...], preferred_element_type=jnp.float32)
    acc = acc + b_ref[...]
    if activation == "gelu":
        acc = _gelu(acc)
    o_ref[...] = acc.astype(o_ref.dtype)


def linear(x, w, b, *, activation=None, out_dtype=jnp.float32, block_m=1024):
    """x: (M, K), w: (K, N), b: (N,). bf16 MXU matmul, f32 accumulate."""
    M, K = x.shape
    N = w.shape[1]
    Kp = _round_up(K, 128)
    Np = _round_up(N, 128)
    TM = _choose_tm(M, block_m)

    xb = x.astype(jnp.bfloat16)
    wb = w.astype(jnp.bfloat16)
    bf = b.astype(jnp.float32).reshape(1, N)
    if Kp != K:
        xb = jnp.pad(xb, ((0, 0), (0, Kp - K)))
        wb = jnp.pad(wb, ((0, Kp - K), (0, 0)))
    if Np != N:
        wb = jnp.pad(wb, ((0, 0), (0, Np - N)))
        bf = jnp.pad(bf, ((0, 0), (0, Np - N)))

    out_itemsize = np.dtype(out_dtype).itemsize
    cost = pl.CostEstimate(
        flops=2 * M * Kp * Np,
        transcendentals=(M * Np if activation == "gelu" else 0),
        bytes_accessed=(M * Kp * 2 + Kp * Np * 2 + Np * 4 + M * Np * out_itemsize),
    )

    out = pl.pallas_call(
        functools.partial(_linear_kernel, activation=activation),
        out_shape=jax.ShapeDtypeStruct((M, Np), out_dtype),
        grid_spec=pltpu.PrefetchScalarGridSpec(
            num_scalar_prefetch=0,
            grid=(pl.cdiv(M, TM),),
            in_specs=[
                pl.BlockSpec((TM, Kp), lambda i: (i, 0)),
                pl.BlockSpec((Kp, Np), lambda i: (0, 0)),
                pl.BlockSpec((1, Np), lambda i: (0, 0)),
            ],
            out_specs=pl.BlockSpec((TM, Np), lambda i: (i, 0)),
        ),
        compiler_params=pltpu.CompilerParams(
            dimension_semantics=("parallel",),
            allow_input_fusion=[True, False, False],
            vmem_limit_bytes=32 * 1024 * 1024,
        ),
        cost_estimate=cost,
    )(xb, wb, bf)

    return out[:, :N]


# ---------------------------------------------------------------------------
# LayerNorm kernel
# ---------------------------------------------------------------------------
def _layer_norm_kernel(x_ref, g_ref, b_ref, o_ref, *, eps):
    x = x_ref[...].astype(jnp.float32)
    mean = jnp.mean(x, axis=-1, keepdims=True)
    xc = x - mean
    var = jnp.mean(xc * xc, axis=-1, keepdims=True)
    inv = jax.lax.rsqrt(var + eps)
    o_ref[...] = (xc * inv * g_ref[...] + b_ref[...]).astype(o_ref.dtype)


def layer_norm(x, gamma, beta, *, eps=1e-5, block_m=1024):
    """x: (M, E) f32; LayerNorm over the last dim with affine params."""
    M, E = x.shape
    TM = _choose_tm(M, block_m)
    if TM != M:
        TM = _round_up(TM, 8)          # sublane alignment when tiling
    g = gamma.astype(jnp.float32).reshape(1, E)
    b = beta.astype(jnp.float32).reshape(1, E)
    return pl.pallas_call(
        functools.partial(_layer_norm_kernel, eps=eps),
        out_shape=jax.ShapeDtypeStruct((M, E), jnp.float32),
        grid_spec=pltpu.PrefetchScalarGridSpec(
            num_scalar_prefetch=0,
            grid=(pl.cdiv(M, TM),),
            in_specs=[
                pl.BlockSpec((TM, E), lambda i: (i, 0)),
                pl.BlockSpec((1, E), lambda i: (0, 0)),
                pl.BlockSpec((1, E), lambda i: (0, 0)),
            ],
            out_specs=pl.BlockSpec((TM, E), lambda i: (i, 0)),
        ),
        compiler_params=pltpu.CompilerParams(
            dimension_semantics=("parallel",),
            vmem_limit_bytes=32 * 1024 * 1024,
        ),
    )(x.astype(jnp.float32), g, b)


# ---------------------------------------------------------------------------
# per-(batch, head) softmax attention kernel
# ---------------------------------------------------------------------------
def _attention_kernel(q_ref, k_ref, v_ref, o_ref, *, scale):
    q = q_ref[0]                      # (S, Dh) f32
    k = k_ref[0]
    v = v_ref[0]
    s = jnp.dot(q, k.T, preferred_element_type=jnp.float32) * scale
    m = jnp.max(s, axis=-1, keepdims=True)
    p = jnp.exp(s - m)
    l = jnp.sum(p, axis=-1, keepdims=True)
    o = jnp.dot(p / l, v, preferred_element_type=jnp.float32)
    o_ref[0] = o.astype(o_ref.dtype)


def attention(q, k, v):
    """q, k, v: (B*H, S, Dh) f32. Full softmax(QK^T/sqrt(Dh)) V per batch*head.
    S = num_patches + 1 fits VMEM at ViT scales; no online softmax needed."""
    BH, S, Dh = q.shape
    scale = 1.0 / math.sqrt(Dh)
    spec = pl.BlockSpec((1, S, Dh), lambda i: (i, 0, 0))
    return pl.pallas_call(
        functools.partial(_attention_kernel, scale=scale),
        out_shape=jax.ShapeDtypeStruct((BH, S, Dh), jnp.float32),
        grid_spec=pltpu.PrefetchScalarGridSpec(
            num_scalar_prefetch=0,
            grid=(BH,),
            in_specs=[spec, spec, spec],
            out_specs=spec,
        ),
        compiler_params=pltpu.CompilerParams(
            dimension_semantics=("parallel",),
            vmem_limit_bytes=32 * 1024 * 1024,
        ),
    )(q.astype(jnp.float32), k.astype(jnp.float32), v.astype(jnp.float32))


# ---------------------------------------------------------------------------
# full ViT forward
# ---------------------------------------------------------------------------
@functools.partial(jax.jit, static_argnames=("patch_size", "num_heads"))
def vit_forward(x, params, *, patch_size, num_heads):
    B = x.shape[0]
    pe = patch_embedding(x, params["patch_w"], params["patch_b"],
                         patch_size=patch_size)                 # (B, N, E) bf16
    pe = pe.astype(jnp.float32)
    E = pe.shape[-1]
    cls = jnp.broadcast_to(params["cls"], (B, 1, E))
    h = jnp.concatenate([cls, pe], axis=1) + params["pos"]       # (B, S, E)
    # TODO(synk): embedding dropout -> identity (inference mode).
    S = h.shape[1]
    Dh = E // num_heads

    for layer in params["layers"]:
        # ---- MSA block (pre-LN) ----
        y = layer_norm(h.reshape(B * S, E), layer["ln1_g"], layer["ln1_b"])
        qkv = linear(y, layer["w_qkv"], layer["b_qkv"])          # (B*S, 3E)
        qkv = qkv.reshape(B, S, 3, num_heads, Dh)
        q = qkv[:, :, 0].transpose(0, 2, 1, 3).reshape(B * num_heads, S, Dh)
        k = qkv[:, :, 1].transpose(0, 2, 1, 3).reshape(B * num_heads, S, Dh)
        v = qkv[:, :, 2].transpose(0, 2, 1, 3).reshape(B * num_heads, S, Dh)
        o = attention(q, k, v)                                   # (B*H, S, Dh)
        o = o.reshape(B, num_heads, S, Dh).transpose(0, 2, 1, 3).reshape(B * S, E)
        o = linear(o, layer["w_out"], layer["b_out"])
        h = h + o.reshape(B, S, E)
        # ---- MLP block (pre-LN) ----
        y = layer_norm(h.reshape(B * S, E), layer["ln2_g"], layer["ln2_b"])
        m = linear(y, layer["w_mlp1"], layer["b_mlp1"], activation="gelu")
        m = linear(m, layer["w_mlp2"], layer["b_mlp2"])
        # TODO(synk): MLP dropout -> identity (inference mode).
        h = h + m.reshape(B, S, E)

    # ---- classifier head on the cls token ----
    y = layer_norm(h[:, 0], params["head_ln_g"], params["head_ln_b"])
    return linear(y, params["head_w"], params["head_b"])


# ---------------------------------------------------------------------------
# pure-jnp reference with matching dtype handling (bf16 matmuls, f32 accum)
# ---------------------------------------------------------------------------
def _ref_linear(x, w, b, activation=None):
    y = jnp.dot(x.astype(jnp.bfloat16), w.astype(jnp.bfloat16),
                preferred_element_type=jnp.float32) + b.astype(jnp.float32)
    if activation == "gelu":
        y = _gelu(y)
    return y


def _ref_layer_norm(x, g, b, eps=1e-5):
    mean = jnp.mean(x, axis=-1, keepdims=True)
    xc = x - mean
    var = jnp.mean(xc * xc, axis=-1, keepdims=True)
    return xc * jax.lax.rsqrt(var + eps) * g + b


def vit_reference(x, params, *, patch_size, num_heads):
    B, C, H, W = x.shape
    P = patch_size
    E = params["patch_w"].shape[0]
    nh, nw = H // P, W // P
    N = nh * nw
    xb = x.astype(jnp.bfloat16)
    xp = xb.reshape(B, C, nh, P, nw, P).transpose(0, 2, 4, 1, 3, 5)
    xp = xp.reshape(B * N, C * P * P)
    w2d = params["patch_w"].reshape(E, C * P * P).T.astype(jnp.bfloat16)
    pe = (jnp.dot(xp, w2d, preferred_element_type=jnp.float32)
          + params["patch_b"][None, :]).astype(jnp.bfloat16).astype(jnp.float32)
    pe = pe.reshape(B, N, E)
    cls = jnp.broadcast_to(params["cls"], (B, 1, E))
    h = jnp.concatenate([cls, pe], axis=1) + params["pos"]
    S = N + 1
    Dh = E // num_heads
    for layer in params["layers"]:
        y = _ref_layer_norm(h.reshape(B * S, E), layer["ln1_g"], layer["ln1_b"])
        qkv = _ref_linear(y, layer["w_qkv"], layer["b_qkv"]).reshape(B, S, 3, num_heads, Dh)
        q = qkv[:, :, 0].transpose(0, 2, 1, 3)
        k = qkv[:, :, 1].transpose(0, 2, 1, 3)
        v = qkv[:, :, 2].transpose(0, 2, 1, 3)
        s = jnp.einsum("bhqd,bhkd->bhqk", q, k) / math.sqrt(Dh)
        p = jax.nn.softmax(s, axis=-1)
        o = jnp.einsum("bhqk,bhkd->bhqd", p, v).transpose(0, 2, 1, 3).reshape(B * S, E)
        o = _ref_linear(o, layer["w_out"], layer["b_out"])
        h = h + o.reshape(B, S, E)
        y = _ref_layer_norm(h.reshape(B * S, E), layer["ln2_g"], layer["ln2_b"])
        m = _ref_linear(y, layer["w_mlp1"], layer["b_mlp1"], activation="gelu")
        m = _ref_linear(m, layer["w_mlp2"], layer["b_mlp2"])
        h = h + m.reshape(B, S, E)
    y = _ref_layer_norm(h[:, 0], params["head_ln_g"], params["head_ln_b"])
    return _ref_linear(y, params["head_w"], params["head_b"])


# ---------------------------------------------------------------------------
if __name__ == "__main__":
    # Small shapes consistent with the module: B=2, C=4, 16x16 image, P=8
    # -> 4 patches (seq=5 with cls token), embed_dim=32, 4 heads, mlp=64,
    # 2 encoder layers, 10 classes.
    B, C, H, W = 2, 4, 16, 16
    P = 8
    E = 32
    num_heads = 4
    mlp_size = 64
    num_layers = 2
    n_classes = 10

    nh, nw = H // P, W // P
    num_patches = nh * nw

    key = jax.random.PRNGKey(0)
    keys = jax.random.split(key, 8)
    x = jax.random.normal(keys[0], (B, C, H, W), dtype=jnp.float32)

    def wparam(k, shape, scale=0.02):
        return jax.random.normal(k, shape, dtype=jnp.float32) * scale

    params = {
        "patch_w": wparam(keys[1], (E, C, P, P)),
        "patch_b": wparam(keys[2], (E,)),
        "cls": wparam(keys[3], (1, 1, E)),
        "pos": wparam(keys[4], (1, num_patches + 1, E)),
        "layers": [],
        "head_ln_g": jnp.ones((E,), jnp.float32),
        "head_ln_b": jnp.zeros((E,), jnp.float32),
        "head_w": wparam(keys[5], (E, n_classes)),
        "head_b": wparam(keys[6], (n_classes,)),
    }
    lkey = keys[7]
    for _ in range(num_layers):
        lkey, *ks = jax.random.split(lkey, 7)
        params["layers"].append({
            "ln1_g": jnp.ones((E,), jnp.float32),
            "ln1_b": jnp.zeros((E,), jnp.float32),
            "w_qkv": wparam(ks[0], (E, 3 * E)),
            "b_qkv": wparam(ks[1], (3 * E,)),
            "w_out": wparam(ks[2], (E, E)),
            "b_out": wparam(ks[3], (E,)),
            "ln2_g": jnp.ones((E,), jnp.float32),
            "ln2_b": jnp.zeros((E,), jnp.float32),
            "w_mlp1": wparam(ks[4], (E, mlp_size)),
            "b_mlp1": jnp.zeros((mlp_size,), jnp.float32),
            "w_mlp2": wparam(ks[5], (mlp_size, E)),
            "b_mlp2": jnp.zeros((E,), jnp.float32),
        })

    logits = vit_forward(x, params, patch_size=P, num_heads=num_heads)
    logits = jax.block_until_ready(logits)
    assert logits.shape == (B, n_classes), logits.shape

    # End-to-end check against a pure-jnp reference with matching dtype handling.
    ref = vit_reference(x, params, patch_size=P, num_heads=num_heads)
    err = float(jnp.max(jnp.abs(logits - ref)))
    assert jnp.allclose(logits, ref, atol=1e-2, rtol=1e-2), err

    # Patch-embedding check against f32 conv semantics (loose: bf16 in/out).
    pe = patch_embedding(x, params["patch_w"], params["patch_b"], patch_size=P)
    pe = pe.astype(jnp.float32)
    conv = jax.lax.conv_general_dilated(
        x, params["patch_w"], window_strides=(P, P), padding="VALID",
        dimension_numbers=("NCHW", "OIHW", "NCHW"),
    ) + params["patch_b"].reshape(1, E, 1, 1)
    conv = conv.reshape(B, E, num_patches).transpose(0, 2, 1)
    assert jnp.allclose(pe, conv, atol=3e-2, rtol=3e-2), float(
        jnp.max(jnp.abs(pe - conv)))

    print("KERNEL_OK")
</pallas_src>

<mosaic_0001>
module attributes {stable_mosaic.version = 11 : i64} {
  func.func @_patch_embed_kernel(%arg0: i32, %arg1: memref<8x256xbf16, #tpu.memory_space<vmem>>, %arg2: memref<256x128xbf16, #tpu.memory_space<vmem>>, %arg3: memref<1x128xf32, #tpu.memory_space<vmem>>, %arg4: memref<8x128xbf16, #tpu.memory_space<vmem>>) attributes {dimension_semantics = [#tpu.dimension_semantics<parallel>], iteration_bounds = array<i64: 1>, scalar_prefetch = 0 : i64, scratch_operands = 0 : i64, tpu.core_type = #tpu.core_type<tc>, window_params = [{transform_indices = @transform_0, window_bounds = array<i64: 8, 256>}, {pipeline_mode = #tpu.pipeline_mode<synchronous>, transform_indices = @transform_1, window_bounds = array<i64: 256, 128>}, {pipeline_mode = #tpu.pipeline_mode<synchronous>, transform_indices = @transform_2, window_bounds = array<i64: 1, 128>}, {transform_indices = @transform_3, window_bounds = array<i64: 8, 128>}]} {
    %c0 = arith.constant 0 : index
    %c0_0 = arith.constant 0 : index
    %0 = vector.load %arg1[%c0, %c0_0] : memref<8x256xbf16, #tpu.memory_space<vmem>>, vector<8x256xbf16>
    %c0_1 = arith.constant 0 : index
    %c0_2 = arith.constant 0 : index
    %1 = vector.load %arg2[%c0_1, %c0_2] : memref<256x128xbf16, #tpu.memory_space<vmem>>, vector<256x128xbf16>
    %cst = arith.constant dense<0.000000e+00> : vector<8x128xf32>
    %2 = tpu.matmul %0, %1, %cst {dimension_numbers = #tpu.dot_dimension_numbers<[1], [0], [0], [1], [0, 0, 1, 1], [], []>} : vector<8x256xbf16>, vector<256x128xbf16>, vector<8x128xf32> -> vector<8x128xf32>
    %c0_3 = arith.constant 0 : index
    %c0_4 = arith.constant 0 : index
    %3 = vector.load %arg3[%c0_3, %c0_4] : memref<1x128xf32, #tpu.memory_space<vmem>>, vector<1x128xf32>
    %4 = vector.broadcast %3 : vector<1x128xf32> to vector<8x128xf32>
    %5 = arith.addf %2, %4 : vector<8x128xf32>
    %6 = arith.truncf %5 : vector<8x128xf32> to vector<8x128xbf16>
    %c0_5 = arith.constant 0 : index
    %c0_6 = arith.constant 0 : index
    %7 = vector.load %arg4[%c0_5, %c0_6] : memref<8x128xbf16, #tpu.memory_space<vmem>>, vector<8x128xbf16>
    tpu.vector_store %arg4[%c0_5, %c0_6], %6 {strides = array<i32>} : memref<8x128xbf16, #tpu.memory_space<vmem>>, vector<8x128xbf16>,
    return
  }
  func.func @transform_0(%arg0: i32) -> (i32, i32) {
    %c0_i32 = arith.constant 0 : i32
    %c0_i32_0 = arith.constant 0 : i32
    return %arg0, %c0_i32 : i32, i32
  }
  func.func @transform_1(%arg0: i32) -> (i32, i32) {
    %c0_i32 = arith.constant 0 : i32
    %c0_i32_0 = arith.constant 0 : i32
    %c0_i32_1 = arith.constant 0 : i32
    return %c0_i32, %c0_i32_0 : i32, i32
  }
  func.func @transform_2(%arg0: i32) -> (i32, i32) {
    %c0_i32 = arith.constant 0 : i32
    %c0_i32_0 = arith.constant 0 : i32
    %c0_i32_1 = arith.constant 0 : i32
    return %c0_i32, %c0_i32_0 : i32, i32
  }
  func.func @transform_3(%arg0: i32) -> (i32, i32) {
    %c0_i32 = arith.constant 0 : i32
    %c0_i32_0 = arith.constant 0 : i32
    return %arg0, %c0_i32 : i32, i32
  }
}

</mosaic_0001>

<bundles_post_ra>
// kernel: patch_embedding.1
= control target key start
LH: loop header
LB: loop body
LE: loop exit
PB: predicated region body
PF: predicated region fallthrough
CT: control target
= control target key end

     0   :  { %s386_s0 = inlined_call_operand.vmem [shape: bf16[8,256], index: 0, kind: input, shape index: {}]   ;;  %s387_s1 = inlined_call_operand.vmem [shape: bf16[256,128], index: 1, kind: input, shape index: {}]   ;;  %s388_s2 = inlined_call_operand.vmem [shape: f32[1,128], index: 2, kind: input, shape index: {}]   ;;  %s389_s3 = inlined_call_operand.hbm [shape: bf16[8,128], index: 3, kind: output, shape index: {}]  }
   0x1   :  { %v257_v0 = vld [vmem:[%s387_s1 + $0x40] sm:$0xff]   ;;  %v259_v2 = vld [vmem:[%s387_s1 + $0x48] sm:$0xff]   ;;  %v261_v4 = vld [vmem:[%s387_s1 + $0x50] sm:$0xff]  }
   0x2   :  { %v258_v1 = vld [vmem:[%s387_s1] sm:$0xff]   ;;  %234 = vmatprep.subr.bf16.mxu0 %v257_v0  ;;  %v260_v3 = vld [vmem:[%s387_s1 + $0x8] sm:$0xff]   ;;  %v262_v5 = vld [vmem:[%s387_s1 + $0x10] sm:$0xff]  }
   0x3   :  { %235 = vmatpush3.bf16.msra.mxu0 %v258_v1  ;;  %v263_v6 = vld [vmem:[%s387_s1 + $0x58] sm:$0xff]   ;;  %v265_v8 = vld [vmem:[%s387_s1 + $0x60] sm:$0xff]   ;;  %v267_v10 = vld [vmem:[%s387_s1 + $0x68] sm:$0xff]  }
   0x4   :  { %236 = vmatprep.subr.bf16.mxu0 %v259_v2  ;;  %v264_v7 = vld [vmem:[%s387_s1 + $0x18] sm:$0xff]   ;;  %v266_v9 = vld [vmem:[%s387_s1 + $0x20] sm:$0xff]  }
   0x5   :  { %v16_v11 = vld [vmem:[%s386_s0] sm:$0xff] }
   0x7   :  { %237 = vmatpush3.bf16.msra.mxu0 %v260_v3 }
   0x8   :  { %238 = vmatprep.subr.bf16.mxu0 %v261_v4 }
   0xb   :  { %239 = vmatpush3.bf16.msra.mxu0 %v262_v5 }
   0xc   :  { %240 = vmatprep.subr.bf16.mxu0 %v263_v6 }
   0xf   :  { %241 = vmatpush3.bf16.msra.mxu0 %v264_v7 }
  0x10   :  { %242 = vmatprep.subr.bf16.mxu0 %v265_v8 }
  0x11   :  { %8 = vsyncpa [#allocation3], 0  ;;  %v217_v12 = vcombine.high %v16_v11, %v16_v11  ;;  %v268_v13 = vld [vmem:[%s387_s1 + $0x28] sm:$0xff]   ;;  %v269_v14 = vld [vmem:[%s387_s1 + $0x70] sm:$0xff]   ;;  %v216_v18 = vcombine.low %v16_v11, %v16_v11  ;;  %s299_s20 = smov [#allocation2]  }
  0x12   :  { %v270_v15 = vld [vmem:[%s387_s1 + $0x30] sm:$0xff]   ;;  %v271_v16 = vld [vmem:[%s387_s1 + $0x78] sm:$0xff]   ;;  %v215_v20 = vld [vmem:[%s388_s2] ss:$0 sm:$0xff]  ;;  %s207_s21 = sshll.u32 %s299_s20, 4  ;;  %s208_s21 = int_to_ptr.vmem [resolvable:$true] %s207_s21 }
  0x13   :  { %243 = vmatpush3.bf16.msra.mxu0 %v266_v9  ;;  %191 = vmatprep.mubr.bf16.mxu0 %v217_v12  ;;  %v272_v17 = vld [vmem:[%s387_s1 + $0x38] sm:$0xff]   ;;  %s275_s1 = scalar_lea.vmem %s208_s21, 64  ;;  %p280_p1 = scmp.lt.s32.totalorder %s208_s21, %s208_s21 }
  0x14   :  { %244 = vmatprep.subr.bf16.mxu0 %v267_v10  ;;  %p276_p0 = scmp.ne.s32.totalorder %s208_s21, %s275_s1  ;;  %p281_p2 = scmp.lt.s32.totalorder %s275_s1, %s275_s1 }
  0x16   :  { %p282_p3 = por %p281_p2, %p280_p1 }
  0x17   :  { %245 = vmatpush3.bf16.msra.mxu0 %v268_v13 }
  0x18   :  { %246 = vmatprep.subr.bf16.mxu0 %v269_v14  ;;  %p283_p4 = pnand %p282_p3, %p276_p0 }
  0x1b   :  { %247 = vmatpush3.bf16.msra.mxu0 %v270_v15 }
  0x1c   :  { %248 = vmatprep.subr.bf16.mxu0 %v271_v16 }
  0x1f   :  { %249 = vmatpush3.bf16.msra.mxu0 %v272_v17 }
  0x22   :  { %192 = vmatmul.mubr.bf16.vlgmr.msra.gmra.mrb[0].mxu0 %v216_v18 }
  0xf5   :  { %v250_v19 = vpop.f32.mrb[0].mxu0 }
  0xf6   :  { %v251_v21 = vpop.f32.mrb[1].mxu0 }
  0xf7   :  { %v252_v22 = vadd.f32 %v251_v21, %v250_v19  ;;  %v253_v23 = vpop.f32.mrb[2].mxu0 }
  0xf8   :  { %v254_v24 = vpop.f32.mrb[3].mxu0 }
  0xf9   :  { %v194_v25 = vadd.f32 %v252_v22, %v215_v20 }
  0xfb   :  { %v199_v26 = vpack.c.bf16 %v194_v25, %v194_v25 }
  0xfd   :  { %200 = vst [vmem:[#allocation2] sm:$0xf] %v199_v26 }
  0xfe   :  { %286 = shalt.err (!%p283_p4)
}
  0xff   :  { %s287_s2 = scalar_lea.hbm %s389_s3, 64 }
 0x100   :  { %p288_p5 = scmp.ne.s32.totalorder %s389_s3, %s287_s2  ;;  %p291_p6 = scmp.lt.u32.totalorder %s287_s2, %s389_s3 }
 0x102   :  { %p293_p7 = pnand %p291_p6, %p288_p5 }
 0x104   :  { %296 = shalt.err (!%p293_p7)
}
 0x105   :  { %210 = dma.vmem_to_hbm [thread:$0]  %s208_s21, 64, %s389_s3, [#allocation3]  }
 0x106   :  { %297 = dma.done.wait [#allocation3], 64  }
 0x107   :  { %298 = vsyncadd [#allocation3], 4294967232 }
 0x108   :  { %214 = vsyncpa [#allocation3], 1 }

</bundles_post_ra>
